<compile_context>
chip_gen: v7x
topology: tpu7x:2x2x1
jax: 0.10.0
libtpu: 0.0.40
codegen_flags: <defaults>
</compile_context>

<pallas_src>
import functools

import jax
import jax.numpy as jnp
import numpy as np
from jax.experimental import pallas as pl
from jax.experimental.pallas import tpu as pltpu


def _box_kernel(a_ref, bp_ref, x_ref, o_ref):
    # a_ref : (H, H)    scaled row operator (reflect pad + window sum, /(2r+1)^2)
    # bp_ref: (W, W)    column operator (reflect pad + window sum, transposed)
    # x_ref : (P, H, W) P whole input planes in natural NCHW sub-layout
    # o_ref : (P, H, W)
    P, H, W = x_ref.shape
    x = x_ref[...].astype(jnp.float32)

    # Column op for all P planes as a single flattened matmul (M = P*H):
    # this is what amortizes per-step overhead and fills the MXU (review #1).
    t = jnp.dot(x.reshape(P * H, W), bp_ref[...],
                preferred_element_type=jnp.float32).reshape(P, H, W)

    # Row op: per-plane (H, H) @ (H, W).  Static unrolled loop: each result
    # streams straight into its output slot and avoids the (H, P, W)->(P, H, W)
    # relayout a batched einsum would insert.
    a = a_ref[...]
    for p in range(P):
        o_ref[p] = jnp.dot(
            a, t[p], preferred_element_type=jnp.float32).astype(o_ref.dtype)


def _reflect_box_operator_np(L, r):
    """(L, L) operator: Op[i, m] = #{p in [i, i+2r] : reflect(p - r) == m}.

    Exactly the composition of F.pad(mode='reflect') with the (2r+1)-wide
    window sum along one axis.
    """
    Lp = L + 2 * r
    p = np.arange(Lp)
    m = np.abs(p - r)                                    # left reflection
    m = np.where(m > L - 1, 2 * (L - 1) - m, m)          # right reflection
    refl = (m[:, None] == np.arange(L)[None, :]).astype(np.float32)   # (Lp, L)
    i = np.arange(L)[:, None]
    band = ((p[None, :] >= i) & (p[None, :] <= i + 2 * r)).astype(np.float32)
    return band @ refl                                   # (L, L) small counts


@functools.lru_cache(maxsize=None)
def _operators(H, W, r):
    """Cached per-(H, W, r) operators (review #9)."""
    scale = 1.0 / float((2 * r + 1) ** 2)
    A = _reflect_box_operator_np(H, r) * scale           # scale folded in
    Bp = _reflect_box_operator_np(W, r).T                # column operator
    return jnp.asarray(A, jnp.float32), jnp.asarray(np.ascontiguousarray(Bp),
                                                    jnp.float32)


def _planes_per_step(NC, H, W):
    """Planes per grid step: big enough to amortize the ~0.35us step overhead
    and give the flattened column matmul a large M, bounded by VMEM and by the
    row-op unroll length."""
    plane_bytes = H * W * 4                      # f32 working size
    vmem_budget = 24 * 1024 * 1024               # for x/o blocks (x2 buf) + t
    by_vmem = max(1, vmem_budget // (5 * plane_bytes))
    by_rows = max(1, 1024 // max(H, 1))          # target M ~ 1024 rows
    return int(max(1, min(32, by_rows, by_vmem, NC)))


def _vmem_limit_bytes(P, H, W, dtype):
    """Per-generation VMEM cap derived from the real footprint (review #3)."""
    itemsize = jnp.dtype(dtype).itemsize
    blocks = 2 * 2 * P * H * W * itemsize        # double-buffered x + o blocks
    ops = 2 * (H * H + W * W) * 4                # A, Bp (double-buffered)
    interm = 2 * P * H * W * 4                   # f32 cast copy + t
    need = blocks + ops + interm + (4 << 20)     # + Mosaic internal slack
    try:
        cap = int(getattr(pltpu.get_tpu_info(), "vmem_capacity_bytes"))
    except Exception:
        cap = 64 * 1024 * 1024                   # conservative (v7x) fallback
    # Leave headroom for compiler scratch/semaphores; never ask below need.
    return int(min(cap - (8 << 20), max(2 * need, 32 << 20)))


@functools.partial(jax.jit, static_argnums=1)
def box_filter(x, r):
    """Pallas implementation of BoxFilter(r).forward(x); x is NCHW."""
    assert x.ndim == 4
    N, C, H, W = x.shape
    # Same constraint as PyTorch F.pad(mode='reflect'): pad must be < dim.
    assert 1 <= r <= min(H, W) - 1, "reflect pad requires r <= H-1 and r <= W-1"

    A, Bp = _operators(H, W, r)

    NC = N * C
    xr = x.reshape(NC, H, W)                     # free reshape, no HBM copy
    P = _planes_per_step(NC, H, W)
    grid = (pl.cdiv(NC, P),)                     # partial last block is fine

    out = pl.pallas_call(
        _box_kernel,
        out_shape=jax.ShapeDtypeStruct((NC, H, W), x.dtype),
        grid_spec=pltpu.PrefetchScalarGridSpec(
            num_scalar_prefetch=0,
            grid=grid,
            in_specs=[
                pl.BlockSpec((H, H), lambda i: (0, 0)),       # A  (grid-invariant)
                pl.BlockSpec((W, W), lambda i: (0, 0)),       # Bp (grid-invariant)
                pl.BlockSpec((P, H, W), lambda i: (i, 0, 0)), # P whole planes
            ],
            out_specs=pl.BlockSpec((P, H, W), lambda i: (i, 0, 0)),
        ),
        compiler_params=pltpu.CompilerParams(
            dimension_semantics=("parallel",),
            vmem_limit_bytes=_vmem_limit_bytes(P, H, W, x.dtype)),
    )(A, Bp, xr)

    return out.reshape(N, C, H, W)


def _reference(x, r):
    # Pure-JAX transcription of the PyTorch cumsum/diff algorithm (for checking).
    s = jnp.pad(x, ((0, 0), (0, 0), (r, r), (r, r)), mode="reflect")
    s = jnp.cumsum(s, axis=-2)
    left = s[..., r:2 * r + 1, :]
    middle = s[..., 2 * r + 1:, :] - s[..., :-2 * r - 1, :]
    right = s[..., -1:, :] - s[..., -2 * r - 1:-r - 1, :]
    s = jnp.concatenate([left, middle, right], axis=-2)
    s = jnp.cumsum(s, axis=-1)
    left = s[..., r:2 * r + 1]
    middle = s[..., 2 * r + 1:] - s[..., :-2 * r - 1]
    right = s[..., -1:] - s[..., -2 * r - 1:-r - 1]
    s = jnp.concatenate([left, middle, right], axis=-1)
    return s[..., r:-r, r:-r] / (2 * r + 1) ** 2


if __name__ == "__main__":
    key = jax.random.PRNGKey(0)
    N, C, H, W, r = 2, 4, 16, 16, 2
    x = jax.random.normal(key, (N, C, H, W), dtype=jnp.float32)

    out = jax.block_until_ready(box_filter(x, r))

    ref = _reference(x, r)
    assert out.shape == (N, C, H, W) and out.dtype == x.dtype
    assert jnp.allclose(out, ref, rtol=1e-4, atol=1e-4)
    print("KERNEL_OK")
</pallas_src>

<mosaic_0001>
module attributes {stable_mosaic.version = 11 : i64} {
  func.func @_box_kernel(%arg0: i32, %arg1: memref<16x16xf32, #tpu.memory_space<vmem>>, %arg2: memref<16x16xf32, #tpu.memory_space<vmem>>, %arg3: memref<8x16x16xf32, #tpu.memory_space<vmem>>, %arg4: memref<8x16x16xf32, #tpu.memory_space<vmem>>) attributes {dimension_semantics = [#tpu.dimension_semantics<parallel>], iteration_bounds = array<i64: 1>, scalar_prefetch = 0 : i64, scratch_operands = 0 : i64, tpu.core_type = #tpu.core_type<tc>, window_params = [{pipeline_mode = #tpu.pipeline_mode<synchronous>, transform_indices = @transform_0, window_bounds = array<i64: 16, 16>}, {pipeline_mode = #tpu.pipeline_mode<synchronous>, transform_indices = @transform_1, window_bounds = array<i64: 16, 16>}, {transform_indices = @transform_2, window_bounds = array<i64: 8, 16, 16>}, {transform_indices = @transform_3, window_bounds = array<i64: 8, 16, 16>}]} {
    %c0 = arith.constant 0 : index
    %c0_0 = arith.constant 0 : index
    %c0_1 = arith.constant 0 : index
    %0 = vector.load %arg3[%c0, %c0_0, %c0_1] : memref<8x16x16xf32, #tpu.memory_space<vmem>>, vector<8x16x16xf32>
    %1 = vector.shape_cast %0 : vector<8x16x16xf32> to vector<128x16xf32>
    %c0_2 = arith.constant 0 : index
    %c0_3 = arith.constant 0 : index
    %2 = vector.load %arg2[%c0_2, %c0_3] : memref<16x16xf32, #tpu.memory_space<vmem>>, vector<16x16xf32>
    %cst = arith.constant dense<0.000000e+00> : vector<128x16xf32>
    %3 = tpu.matmul %1, %2, %cst {dimension_numbers = #tpu.dot_dimension_numbers<[1], [0], [0], [1], [0, 0, 1, 1], [], []>} : vector<128x16xf32>, vector<16x16xf32>, vector<128x16xf32> -> vector<128x16xf32>
    %4 = vector.shape_cast %3 : vector<128x16xf32> to vector<8x16x16xf32>
    %c0_4 = arith.constant 0 : index
    %c0_5 = arith.constant 0 : index
    %5 = vector.load %arg1[%c0_4, %c0_5] : memref<16x16xf32, #tpu.memory_space<vmem>>, vector<16x16xf32>
    %6 = vector.extract_strided_slice %4 {offsets = [0, 0, 0], sizes = [1, 16, 16], strides = [1, 1, 1]} : vector<8x16x16xf32> to vector<1x16x16xf32>
    %7 = vector.shape_cast %6 : vector<1x16x16xf32> to vector<16x16xf32>
    %cst_6 = arith.constant dense<0.000000e+00> : vector<16x16xf32>
    %8 = tpu.matmul %5, %7, %cst_6 {dimension_numbers = #tpu.dot_dimension_numbers<[1], [0], [0], [1], [0, 0, 1, 1], [], []>} : vector<16x16xf32>, vector<16x16xf32>, vector<16x16xf32> -> vector<16x16xf32>
    %c0_7 = arith.constant 0 : index
    %c0_8 = arith.constant 0 : index
    %c0_9 = arith.constant 0 : index
    %9 = vector.load %arg4[%c0_7, %c0_8, %c0_9] : memref<8x16x16xf32, #tpu.memory_space<vmem>>, vector<1x16x16xf32>
    %10 = vector.shape_cast %9 : vector<1x16x16xf32> to vector<16x16xf32>
    %11 = vector.shape_cast %8 : vector<16x16xf32> to vector<1x16x16xf32>
    tpu.vector_store %arg4[%c0_7, %c0_8, %c0_9], %11 {strides = array<i32>} : memref<8x16x16xf32, #tpu.memory_space<vmem>>, vector<1x16x16xf32>,
    %12 = vector.extract_strided_slice %4 {offsets = [1, 0, 0], sizes = [1, 16, 16], strides = [1, 1, 1]} : vector<8x16x16xf32> to vector<1x16x16xf32>
    %13 = vector.shape_cast %12 : vector<1x16x16xf32> to vector<16x16xf32>
    %cst_10 = arith.constant dense<0.000000e+00> : vector<16x16xf32>
    %14 = tpu.matmul %5, %13, %cst_10 {dimension_numbers = #tpu.dot_dimension_numbers<[1], [0], [0], [1], [0, 0, 1, 1], [], []>} : vector<16x16xf32>, vector<16x16xf32>, vector<16x16xf32> -> vector<16x16xf32>
    %c1 = arith.constant 1 : index
    %c0_11 = arith.constant 0 : index
    %c0_12 = arith.constant 0 : index
    %15 = vector.load %arg4[%c1, %c0_11, %c0_12] : memref<8x16x16xf32, #tpu.memory_space<vmem>>, vector<1x16x16xf32>
    %16 = vector.shape_cast %15 : vector<1x16x16xf32> to vector<16x16xf32>
    %17 = vector.shape_cast %14 : vector<16x16xf32> to vector<1x16x16xf32>
    tpu.vector_store %arg4[%c1, %c0_11, %c0_12], %17 {strides = array<i32>} : memref<8x16x16xf32, #tpu.memory_space<vmem>>, vector<1x16x16xf32>,
    %18 = vector.extract_strided_slice %4 {offsets = [2, 0, 0], sizes = [1, 16, 16], strides = [1, 1, 1]} : vector<8x16x16xf32> to vector<1x16x16xf32>
    %19 = vector.shape_cast %18 : vector<1x16x16xf32> to vector<16x16xf32>
    %cst_13 = arith.constant dense<0.000000e+00> : vector<16x16xf32>
    %20 = tpu.matmul %5, %19, %cst_13 {dimension_numbers = #tpu.dot_dimension_numbers<[1], [0], [0], [1], [0, 0, 1, 1], [], []>} : vector<16x16xf32>, vector<16x16xf32>, vector<16x16xf32> -> vector<16x16xf32>
    %c2 = arith.constant 2 : index
    %c0_14 = arith.constant 0 : index
    %c0_15 = arith.constant 0 : index
    %21 = vector.load %arg4[%c2, %c0_14, %c0_15] : memref<8x16x16xf32, #tpu.memory_space<vmem>>, vector<1x16x16xf32>
    %22 = vector.shape_cast %21 : vector<1x16x16xf32> to vector<16x16xf32>
    %23 = vector.shape_cast %20 : vector<16x16xf32> to vector<1x16x16xf32>
    tpu.vector_store %arg4[%c2, %c0_14, %c0_15], %23 {strides = array<i32>} : memref<8x16x16xf32, #tpu.memory_space<vmem>>, vector<1x16x16xf32>,
    %24 = vector.extract_strided_slice %4 {offsets = [3, 0, 0], sizes = [1, 16, 16], strides = [1, 1, 1]} : vector<8x16x16xf32> to vector<1x16x16xf32>
    %25 = vector.shape_cast %24 : vector<1x16x16xf32> to vector<16x16xf32>
    %cst_16 = arith.constant dense<0.000000e+00> : vector<16x16xf32>
    %26 = tpu.matmul %5, %25, %cst_16 {dimension_numbers = #tpu.dot_dimension_numbers<[1], [0], [0], [1], [0, 0, 1, 1], [], []>} : vector<16x16xf32>, vector<16x16xf32>, vector<16x16xf32> -> vector<16x16xf32>
    %c3 = arith.constant 3 : index
    %c0_17 = arith.constant 0 : index
    %c0_18 = arith.constant 0 : index
    %27 = vector.load %arg4[%c3, %c0_17, %c0_18] : memref<8x16x16xf32, #tpu.memory_space<vmem>>, vector<1x16x16xf32>
    %28 = vector.shape_cast %27 : vector<1x16x16xf32> to vector<16x16xf32>
    %29 = vector.shape_cast %26 : vector<16x16xf32> to vector<1x16x16xf32>
    tpu.vector_store %arg4[%c3, %c0_17, %c0_18], %29 {strides = array<i32>} : memref<8x16x16xf32, #tpu.memory_space<vmem>>, vector<1x16x16xf32>,
    %30 = vector.extract_strided_slice %4 {offsets = [4, 0, 0], sizes = [1, 16, 16], strides = [1, 1, 1]} : vector<8x16x16xf32> to vector<1x16x16xf32>
    %31 = vector.shape_cast %30 : vector<1x16x16xf32> to vector<16x16xf32>
    %cst_19 = arith.constant dense<0.000000e+00> : vector<16x16xf32>
    %32 = tpu.matmul %5, %31, %cst_19 {dimension_numbers = #tpu.dot_dimension_numbers<[1], [0], [0], [1], [0, 0, 1, 1], [], []>} : vector<16x16xf32>, vector<16x16xf32>, vector<16x16xf32> -> vector<16x16xf32>
    %c4 = arith.constant 4 : index
    %c0_20 = arith.constant 0 : index
    %c0_21 = arith.constant 0 : index
    %33 = vector.load %arg4[%c4, %c0_20, %c0_21] : memref<8x16x16xf32, #tpu.memory_space<vmem>>, vector<1x16x16xf32>
    %34 = vector.shape_cast %33 : vector<1x16x16xf32> to vector<16x16xf32>
    %35 = vector.shape_cast %32 : vector<16x16xf32> to vector<1x16x16xf32>
    tpu.vector_store %arg4[%c4, %c0_20, %c0_21], %35 {strides = array<i32>} : memref<8x16x16xf32, #tpu.memory_space<vmem>>, vector<1x16x16xf32>,
    %36 = vector.extract_strided_slice %4 {offsets = [5, 0, 0], sizes = [1, 16, 16], strides = [1, 1, 1]} : vector<8x16x16xf32> to vector<1x16x16xf32>
    %37 = vector.shape_cast %36 : vector<1x16x16xf32> to vector<16x16xf32>
    %cst_22 = arith.constant dense<0.000000e+00> : vector<16x16xf32>
    %38 = tpu.matmul %5, %37, %cst_22 {dimension_numbers = #tpu.dot_dimension_numbers<[1], [0], [0], [1], [0, 0, 1, 1], [], []>} : vector<16x16xf32>, vector<16x16xf32>, vector<16x16xf32> -> vector<16x16xf32>
    %c5 = arith.constant 5 : index
    %c0_23 = arith.constant 0 : index
    %c0_24 = arith.constant 0 : index
    %39 = vector.load %arg4[%c5, %c0_23, %c0_24] : memref<8x16x16xf32, #tpu.memory_space<vmem>>, vector<1x16x16xf32>
    %40 = vector.shape_cast %39 : vector<1x16x16xf32> to vector<16x16xf32>
    %41 = vector.shape_cast %38 : vector<16x16xf32> to vector<1x16x16xf32>
    tpu.vector_store %arg4[%c5, %c0_23, %c0_24], %41 {strides = array<i32>} : memref<8x16x16xf32, #tpu.memory_space<vmem>>, vector<1x16x16xf32>,
    %42 = vector.extract_strided_slice %4 {offsets = [6, 0, 0], sizes = [1, 16, 16], strides = [1, 1, 1]} : vector<8x16x16xf32> to vector<1x16x16xf32>
    %43 = vector.shape_cast %42 : vector<1x16x16xf32> to vector<16x16xf32>
    %cst_25 = arith.constant dense<0.000000e+00> : vector<16x16xf32>
    %44 = tpu.matmul %5, %43, %cst_25 {dimension_numbers = #tpu.dot_dimension_numbers<[1], [0], [0], [1], [0, 0, 1, 1], [], []>} : vector<16x16xf32>, vector<16x16xf32>, vector<16x16xf32> -> vector<16x16xf32>
    %c6 = arith.constant 6 : index
    %c0_26 = arith.constant 0 : index
    %c0_27 = arith.constant 0 : index
    %45 = vector.load %arg4[%c6, %c0_26, %c0_27] : memref<8x16x16xf32, #tpu.memory_space<vmem>>, vector<1x16x16xf32>
    %46 = vector.shape_cast %45 : vector<1x16x16xf32> to vector<16x16xf32>
    %47 = vector.shape_cast %44 : vector<16x16xf32> to vector<1x16x16xf32>
    tpu.vector_store %arg4[%c6, %c0_26, %c0_27], %47 {strides = array<i32>} : memref<8x16x16xf32, #tpu.memory_space<vmem>>, vector<1x16x16xf32>,
    %48 = vector.extract_strided_slice %4 {offsets = [7, 0, 0], sizes = [1, 16, 16], strides = [1, 1, 1]} : vector<8x16x16xf32> to vector<1x16x16xf32>
    %49 = vector.shape_cast %48 : vector<1x16x16xf32> to vector<16x16xf32>
    %cst_28 = arith.constant dense<0.000000e+00> : vector<16x16xf32>
    %50 = tpu.matmul %5, %49, %cst_28 {dimension_numbers = #tpu.dot_dimension_numbers<[1], [0], [0], [1], [0, 0, 1, 1], [], []>} : vector<16x16xf32>, vector<16x16xf32>, vector<16x16xf32> -> vector<16x16xf32>
    %c7 = arith.constant 7 : index
    %c0_29 = arith.constant 0 : index
    %c0_30 = arith.constant 0 : index
    %51 = vector.load %arg4[%c7, %c0_29, %c0_30] : memref<8x16x16xf32, #tpu.memory_space<vmem>>, vector<1x16x16xf32>
    %52 = vector.shape_cast %51 : vector<1x16x16xf32> to vector<16x16xf32>
    %53 = vector.shape_cast %50 : vector<16x16xf32> to vector<1x16x16xf32>
    tpu.vector_store %arg4[%c7, %c0_29, %c0_30], %53 {strides = array<i32>} : memref<8x16x16xf32, #tpu.memory_space<vmem>>, vector<1x16x16xf32>,
    return
  }
  func.func @transform_0(%arg0: i32) -> (i32, i32) {
    %c0_i32 = arith.constant 0 : i32
    %c0_i32_0 = arith.constant 0 : i32
    %c0_i32_1 = arith.constant 0 : i32
    return %c0_i32, %c0_i32_0 : i32, i32
  }
  func.func @transform_1(%arg0: i32) -> (i32, i32) {
    %c0_i32 = arith.constant 0 : i32
    %c0_i32_0 = arith.constant 0 : i32
    %c0_i32_1 = arith.constant 0 : i32
    return %c0_i32, %c0_i32_0 : i32, i32
  }
  func.func @transform_2(%arg0: i32) -> (i32, i32, i32) {
    %c0_i32 = arith.constant 0 : i32
    %c0_i32_0 = arith.constant 0 : i32
    %c0_i32_1 = arith.constant 0 : i32
    return %arg0, %c0_i32, %c0_i32_0 : i32, i32, i32
  }
  func.func @transform_3(%arg0: i32) -> (i32, i32, i32) {
    %c0_i32 = arith.constant 0 : i32
    %c0_i32_0 = arith.constant 0 : i32
    %c0_i32_1 = arith.constant 0 : i32
    return %arg0, %c0_i32, %c0_i32_0 : i32, i32, i32
  }
}

</mosaic_0001>

<bundles_post_ra>
// kernel: box_filter.1
= control target key start
LH: loop header
LB: loop body
LE: loop exit
PB: predicated region body
PF: predicated region fallthrough
CT: control target
= control target key end

     0   :  { %8 = vsyncpa [#allocation3], 0  ;;  %s1360_s0 = inlined_call_operand.hbm [shape: f32[16,16], index: 0, kind: input, shape index: {}]   ;;  %s1361_s1 = inlined_call_operand.hbm [shape: f32[16,16], index: 1, kind: input, shape index: {}]   ;;  %s1362_s2 = inlined_call_operand.hbm [shape: f32[8,16,16], index: 2, kind: input, shape index: {}]   ;;  %s1363_s3 = inlined_call_operand.hbm [shape: f32[8,16,16], index: 3, kind: output, shape index: {}]  }
   0x1   :  { %9 = vsyncpa [#allocation6], 0 }
   0x2   :  { %10 = vsyncpa [#allocation4], 0  ;;  %s1219_s12 = smov [#allocation5]   ;;  %s1220_s14 = smov [#allocation2]  }
   0x3   :  { %s28_s13 = sshll.u32 %s1219_s12, 4  ;;  %s16_s15 = sshll.u32 %s1220_s14, 4  ;;  %s29_s13 = int_to_ptr.vmem [resolvable:$true] %s28_s13  ;;  %s1245_s15 = int_to_ptr.vmem [resolvable:$true] %s16_s15 }
   0x4   :  { %s1125_s18 = scalar_lea.hbm %s1361_s1, 256 }
   0x5   :  { %p1126_p0 = scmp.ne.s32.totalorder %s1361_s1, %s1125_s18  ;;  %p1129_p1 = scmp.lt.u32.totalorder %s1125_s18, %s1361_s1 }
   0x7   :  { %p1131_p2 = pnand %p1129_p1, %p1126_p0 }
   0x9   :  { %1134 = shalt.err (!%p1131_p2)
}
   0xa   :  { %s1135_s23 = scalar_lea.vmem %s29_s13, 256  ;;  %p1140_p4 = scmp.lt.s32.totalorder %s29_s13, %s29_s13 }
   0xb   :  { %p1136_p3 = scmp.ne.s32.totalorder %s29_s13, %s1135_s23  ;;  %p1141_p5 = scmp.lt.s32.totalorder %s1135_s23, %s1135_s23 }
   0xd   :  { %p1142_p6 = por %p1141_p5, %p1140_p4 }
   0xf   :  { %p1143_p7 = pnand %p1142_p6, %p1136_p3 }
  0x11   :  { %1146 = shalt.err (!%p1143_p7)
}
  0x12   :  { %s1221_s24 = smov 128   ;;  %s1222_s25 = smov 8  }
  0x13   :  { %34 = dma.hbm_to_vmem [thread:$0]  %s1361_s1, 256, %s29_s13, [#allocation6], %s1221_s24, %s1221_s24, %s1222_s25  }
  0x14   :  { %s1147_s30 = scalar_lea.hbm %s1360_s0, 256 }
  0x15   :  { %p1148_p8 = scmp.ne.s32.totalorder %s1360_s0, %s1147_s30  ;;  %p1151_p9 = scmp.lt.u32.totalorder %s1147_s30, %s1360_s0 }
  0x17   :  { %p1153_p10 = pnand %p1151_p9, %p1148_p8 }
  0x19   :  { %1156 = shalt.err (!%p1153_p10)
}
  0x1a   :  { %s1157_s8 = scalar_lea.vmem %s1245_s15, 256  ;;  %p1162_p12 = scmp.lt.s32.totalorder %s1245_s15, %s1245_s15 }
  0x1b   :  { %p1158_p11 = scmp.ne.s32.totalorder %s1245_s15, %s1157_s8  ;;  %p1163_p13 = scmp.lt.s32.totalorder %s1157_s8, %s1157_s8 }
  0x1d   :  { %p1164_p0 = por %p1163_p13, %p1162_p12 }
  0x1f   :  { %p1165_p1 = pnand %p1164_p0, %p1158_p11 }
  0x21   :  { %1168 = shalt.err (!%p1165_p1)
}
  0x22   :  { %22 = dma.hbm_to_vmem [thread:$0]  %s1360_s0, 256, %s1245_s15, [#allocation3], %s1221_s24, %s1221_s24, %s1222_s25  }
  0x23   :  { %s1223_s10 = smov [#allocation7]   ;;  %s1169_s14 = scalar_lea.hbm %s1362_s2, 2048 }
  0x24   :  { %s40_s11 = sshll.u32 %s1223_s10, 4  ;;  %p1170_p2 = scmp.ne.s32.totalorder %s1362_s2, %s1169_s14  ;;  %s41_s11 = int_to_ptr.vmem [resolvable:$true] %s40_s11 }
  0x25   :  { %p1173_p3 = scmp.lt.u32.totalorder %s1169_s14, %s1362_s2 }
  0x27   :  { %p1175_p4 = pnand %p1173_p3, %p1170_p2 }
  0x29   :  { %1178 = shalt.err (!%p1175_p4)
}
  0x2a   :  { %s1179_s20 = scalar_lea.vmem %s41_s11, 2048  ;;  %p1184_p6 = scmp.lt.s32.totalorder %s41_s11, %s41_s11 }
  0x2b   :  { %p1180_p5 = scmp.ne.s32.totalorder %s41_s11, %s1179_s20  ;;  %p1185_p7 = scmp.lt.s32.totalorder %s1179_s20, %s1179_s20 }
  0x2d   :  { %p1186_p8 = por %p1185_p7, %p1184_p6 }
  0x2f   :  { %p1187_p9 = pnand %p1186_p8, %p1180_p5 }
  0x31   :  { %1190 = shalt.err (!%p1187_p9)
}
  0x32   :  { %46 = dma.hbm_to_vmem [thread:$0]  %s1362_s2, 2048, %s41_s11, [#allocation6], %s1221_s24, %s1221_s24, %s1222_s25  }
  0x33   :  { %1213 = dma.done.wait [#allocation3], 256  }
  0x34   :  { %1214 = vsyncadd [#allocation3], 4294967040 }
  0x35   :  { %1215 = dma.done.wait [#allocation6], 2304  }
  0x36   :  { %1216 = vsyncadd [#allocation6], 4294964992  ;;  %vm74_vm0 = vcmask 130048   ;;  %v72_v0 = vld [vmem:[#allocation5] sm:$0xff]  ;;  %v73_v1 = vld [vmem:[#allocation5 + $0x8] sm:$0xff]  ;;  %s1224_s2 = smov [#allocation8]  }
  0x37   :  { %v56_v2 = vld [vmem:[#allocation7] sm:$0xff]  ;;  %v1083_v3 = vpack.c.bf16 %v73_v1, %v72_v0  ;;  %v57_v4 = vld [vmem:[#allocation7 + $0x8] sm:$0xff]  ;;  %v58_v5 = vld [vmem:[#allocation7 + $0x10] sm:$0xff]  ;;  %s904_s21 = sshll.u32 %s1224_s2, 4  ;;  %s905_s21 = int_to_ptr.vmem [resolvable:$true] %s904_s21 }
  0x38   :  { %1003 = vmatprep.mubr.msk.f32.mxu0 %vm74_vm0, %v56_v2  ;;  %v59_v6 = vld [vmem:[#allocation7 + $0x18] sm:$0xff]  ;;  %v60_v7 = vld [vmem:[#allocation7 + $0x20] sm:$0xff]  ;;  %v61_v8 = vld [vmem:[#allocation7 + $0x28] sm:$0xff]  ;;  %s1191_s22 = scalar_lea.vmem %s905_s21, 2048  ;;  %p1196_p11 = scmp.lt.s32.totalorder %s905_s21, %s905_s21 }
  0x39   :  { %1084 = vmatprep.subr.bf16.mxu0 %v1083_v3  ;;  %v62_v9 = vld [vmem:[#allocation7 + $0x30] sm:$0xff]  ;;  %v63_v10 = vld [vmem:[#allocation7 + $0x38] sm:$0xff]  ;;  %v64_v11 = vld [vmem:[#allocation7 + $0x40] sm:$0xff]  ;;  %p1192_p10 = scmp.ne.s32.totalorder %s905_s21, %s1191_s22  ;;  %p1197_p12 = scmp.lt.s32.totalorder %s1191_s22, %s1191_s22 }
  0x3a   :  { %1086 = vmatpush3.bf16.msra.mxu0 %v1083_v3  ;;  %v65_v12 = vld [vmem:[#allocation7 + $0x48] sm:$0xff]  ;;  %v66_v13 = vld [vmem:[#allocation7 + $0x50] sm:$0xff]  ;;  %v67_v14 = vld [vmem:[#allocation7 + $0x58] sm:$0xff] }
  0x3b   :  { %v68_v15 = vld [vmem:[#allocation7 + $0x60] sm:$0xff]  ;;  %v69_v16 = vld [vmem:[#allocation7 + $0x68] sm:$0xff]  ;;  %v70_v17 = vld [vmem:[#allocation7 + $0x70] sm:$0xff]  ;;  %p1198_p13 = por %p1197_p12, %p1196_p11 }
  0x3c   :  { %v71_v18 = vld [vmem:[#allocation7 + $0x78] sm:$0xff]  ;;  %v268_v19 = vld [vmem:[#allocation2] sm:$0xff]  ;;  %v269_v25 = vld [vmem:[#allocation2 + $0x8] sm:$0xff] }
  0x3d   :  { %1004 = vmatmul.mubr.msk.f32.vlgmr.msra.gmra.mrb[0].mxu0 %vm74_vm0, %v57_v4  ;;  %1031 = vmatprep.mubr.msk.f32.mxu1 %vm74_vm0, %v268_v19  ;;  %p1199_p0 = pnand %p1198_p13, %p1192_p10 }
  0x3e   :  { %1006 = vmatprep.mubr.msk.f32.mxu0 %vm74_vm0, %v58_v5 }
  0x41   :  { %1007 = vmatmul.mubr.msk.f32.gmra.mrb[2].mxu0 %vm74_vm0, %v59_v6 }
  0x42   :  { %1009 = vmatprep.mubr.msk.f32.mxu0 %vm74_vm0, %v60_v7 }
  0x45   :  { %1010 = vmatmul.mubr.msk.f32.gmra.mrb[4].mxu0 %vm74_vm0, %v61_v8 }
  0x46   :  { %1012 = vmatprep.mubr.msk.f32.mxu0 %vm74_vm0, %v62_v9 }
  0x49   :  { %1013 = vmatmul.mubr.msk.f32.gmra.mrb[6].mxu0 %vm74_vm0, %v63_v10 }
  0x4a   :  { %1015 = vmatprep.mubr.msk.f32.mxu0 %vm74_vm0, %v64_v11 }
  0x4d   :  { %1016 = vmatmul.mubr.msk.f32.gmra.mrb[8].mxu0 %vm74_vm0, %v65_v12 }
  0x4e   :  { %1018 = vmatprep.mubr.msk.f32.mxu0 %vm74_vm0, %v66_v13 }
  0x51   :  { %1019 = vmatmul.mubr.msk.f32.gmra.mrb[10].mxu0 %vm74_vm0, %v67_v14 }
  0x52   :  { %1021 = vmatprep.mubr.msk.f32.mxu0 %vm74_vm0, %v68_v15 }
  0x55   :  { %1022 = vmatmul.mubr.msk.f32.gmra.mrb[12].mxu0 %vm74_vm0, %v69_v16 }
  0x56   :  { %1024 = vmatprep.mubr.msk.f32.mxu0 %vm74_vm0, %v70_v17 }
  0x59   :  { %1025 = vmatmul.mubr.msk.f32.gmra.mrb[14].mxu0 %vm74_vm0, %v71_v18 }
 0x110   :  { %v1005_v20 = vpop.f32.mrb[0].mxu0 }
 0x111   :  { %v189_v21 = vpop.f32.mrb[1].mxu0 }
 0x112   :  { %v1087_v22 = vpack.c.bf16 %v1005_v20, %v189_v21 }
 0x114   :  { %v1008_v23 = vpop.f32.mrb[2].mxu0  ;;  %1088 = vmatprep.subr.bf16.mxu1 %v1087_v22 }
 0x115   :  { %v199_v24 = vpop.f32.mrb[3].mxu0  ;;  %1090 = vmatpush3.bf16.msra.mxu1 %v1087_v22 }
 0x116   :  { %v1091_v26 = vpack.c.bf16 %v1008_v23, %v199_v24 }
 0x118   :  { %v1011_v27 = vpop.f32.mrb[4].mxu0  ;;  %1032 = vmatmul.mubr.msk.f32.vlgmr.msra.gmra.mrb[0].mxu1 %vm74_vm0, %v269_v25  ;;  %1092 = vmatprep.subr.bf16.mxu1 %v1091_v26 }
 0x119   :  { %v209_v28 = vpop.f32.mrb[5].mxu0  ;;  %1094 = vmatpush3.bf16.msra.mxu1 %v1091_v26  ;;  %1038 = vmatprep.mubr.msk.f32.mxu1 %vm74_vm0, %v268_v19 }
 0x11a   :  { %v1095_v29 = vpack.c.bf16 %v1011_v27, %v209_v28 }
 0x11c   :  { %v1014_v30 = vpop.f32.mrb[6].mxu0  ;;  %1039 = vmatmul.mubr.msk.f32.vlgmr.msra.gmra.mrb[2].mxu1 %vm74_vm0, %v269_v25  ;;  %1096 = vmatprep.subr.bf16.mxu1 %v1095_v29 }
 0x11d   :  { %v219_v31 = vpop.f32.mrb[7].mxu0  ;;  %1098 = vmatpush3.bf16.msra.mxu1 %v1095_v29  ;;  %1045 = vmatprep.mubr.msk.f32.mxu1 %vm74_vm0, %v268_v19 }
 0x11e   :  { %v1099_v32 = vpack.c.bf16 %v1014_v30, %v219_v31 }
 0x120   :  { %v1017_v33 = vpop.f32.mrb[8].mxu0  ;;  %1046 = vmatmul.mubr.msk.f32.vlgmr.msra.gmra.mrb[4].mxu1 %vm74_vm0, %v269_v25  ;;  %1100 = vmatprep.subr.bf16.mxu1 %v1099_v32 }
 0x121   :  { %v229_v34 = vpop.f32.mrb[9].mxu0  ;;  %1102 = vmatpush3.bf16.msra.mxu1 %v1099_v32  ;;  %1052 = vmatprep.mubr.msk.f32.mxu1 %vm74_vm0, %v268_v19 }
 0x122   :  { %v1103_v35 = vpack.c.bf16 %v1017_v33, %v229_v34 }
 0x124   :  { %v1020_v36 = vpop.f32.mrb[10].mxu0  ;;  %1053 = vmatmul.mubr.msk.f32.vlgmr.msra.gmra.mrb[6].mxu1 %vm74_vm0, %v269_v25  ;;  %1104 = vmatprep.subr.bf16.mxu1 %v1103_v35 }
 0x125   :  { %v239_v37 = vpop.f32.mrb[11].mxu0  ;;  %1106 = vmatpush3.bf16.msra.mxu1 %v1103_v35  ;;  %1059 = vmatprep.mubr.msk.f32.mxu1 %vm74_vm0, %v268_v19 }
 0x126   :  { %v1107_v38 = vpack.c.bf16 %v1020_v36, %v239_v37 }
 0x128   :  { %v1023_v39 = vpop.f32.mrb[12].mxu0  ;;  %1060 = vmatmul.mubr.msk.f32.vlgmr.msra.gmra.mrb[8].mxu1 %vm74_vm0, %v269_v25  ;;  %1108 = vmatprep.subr.bf16.mxu1 %v1107_v38 }
 0x129   :  { %v249_v40 = vpop.f32.mrb[13].mxu0  ;;  %1110 = vmatpush3.bf16.msra.mxu1 %v1107_v38  ;;  %1066 = vmatprep.mubr.msk.f32.mxu1 %vm74_vm0, %v268_v19 }
 0x12a   :  { %v1111_v41 = vpack.c.bf16 %v1023_v39, %v249_v40 }
 0x12c   :  { %v1026_v42 = vpop.f32.mrb[14].mxu0  ;;  %1067 = vmatmul.mubr.msk.f32.vlgmr.msra.gmra.mrb[10].mxu1 %vm74_vm0, %v269_v25  ;;  %1112 = vmatprep.subr.bf16.mxu1 %v1111_v41 }
 0x12d   :  { %v259_v43 = vpop.f32.mrb[15].mxu0  ;;  %1114 = vmatpush3.bf16.msra.mxu1 %v1111_v41  ;;  %1073 = vmatprep.mubr.msk.f32.mxu1 %vm74_vm0, %v268_v19 }
 0x12e   :  { %v1115_v44 = vpack.c.bf16 %v1026_v42, %v259_v43 }
 0x130   :  { %1074 = vmatmul.mubr.msk.f32.vlgmr.msra.gmra.mrb[12].mxu1 %vm74_vm0, %v269_v25  ;;  %1116 = vmatprep.subr.bf16.mxu1 %v1115_v44 }
 0x131   :  { %1118 = vmatpush3.bf16.msra.mxu1 %v1115_v44  ;;  %1080 = vmatprep.mubr.msk.f32.mxu1 %vm74_vm0, %v268_v19 }
 0x134   :  { %1081 = vmatmul.mubr.msk.f32.vlgmr.msra.gmra.mrb[14].mxu1 %vm74_vm0, %v269_v25 }
 0x1eb   :  { %v1033_v45 = vpop.f32.mrb[0].mxu1 }
 0x1ec   :  { %352 = vst.msk [vmem:[#allocation8 + $0x8] sm:$0xff] %vm74_vm0, %v1033_v45  ;;  %v342_v46 = vpop.f32.mrb[1].mxu1 }
 0x1ed   :  { %351 = vst.msk [vmem:[#allocation8] sm:$0xff] %vm74_vm0, %v342_v46 }
 0x1ef   :  { %v1040_v47 = vpop.f32.mrb[2].mxu1 }
 0x1f0   :  { %430 = vst.msk [vmem:[#allocation8 + $0x18] sm:$0xff] %vm74_vm0, %v1040_v47  ;;  %v419_v48 = vpop.f32.mrb[3].mxu1 }
 0x1f1   :  { %429 = vst.msk [vmem:[#allocation8 + $0x10] sm:$0xff] %vm74_vm0, %v419_v48 }
 0x1f3   :  { %v1047_v49 = vpop.f32.mrb[4].mxu1 }
 0x1f4   :  { %508 = vst.msk [vmem:[#allocation8 + $0x28] sm:$0xff] %vm74_vm0, %v1047_v49  ;;  %v497_v50 = vpop.f32.mrb[5].mxu1 }
 0x1f5   :  { %507 = vst.msk [vmem:[#allocation8 + $0x20] sm:$0xff] %vm74_vm0, %v497_v50 }
 0x1f7   :  { %v1054_v51 = vpop.f32.mrb[6].mxu1 }
 0x1f8   :  { %586 = vst.msk [vmem:[#allocation8 + $0x38] sm:$0xff] %vm74_vm0, %v1054_v51  ;;  %v575_v52 = vpop.f32.mrb[7].mxu1 }
 0x1f9   :  { %585 = vst.msk [vmem:[#allocation8 + $0x30] sm:$0xff] %vm74_vm0, %v575_v52 }
 0x1fb   :  { %v1061_v53 = vpop.f32.mrb[8].mxu1 }
 0x1fc   :  { %664 = vst.msk [vmem:[#allocation8 + $0x48] sm:$0xff] %vm74_vm0, %v1061_v53  ;;  %v653_v54 = vpop.f32.mrb[9].mxu1 }
 0x1fd   :  { %663 = vst.msk [vmem:[#allocation8 + $0x40] sm:$0xff] %vm74_vm0, %v653_v54 }
 0x1ff   :  { %v1068_v55 = vpop.f32.mrb[10].mxu1 }
 0x200   :  { %742 = vst.msk [vmem:[#allocation8 + $0x58] sm:$0xff] %vm74_vm0, %v1068_v55  ;;  %v731_v56 = vpop.f32.mrb[11].mxu1 }
 0x201   :  { %741 = vst.msk [vmem:[#allocation8 + $0x50] sm:$0xff] %vm74_vm0, %v731_v56 }
 0x203   :  { %v1075_v57 = vpop.f32.mrb[12].mxu1 }
 0x204   :  { %820 = vst.msk [vmem:[#allocation8 + $0x68] sm:$0xff] %vm74_vm0, %v1075_v57  ;;  %v809_v58 = vpop.f32.mrb[13].mxu1 }
 0x205   :  { %819 = vst.msk [vmem:[#allocation8 + $0x60] sm:$0xff] %vm74_vm0, %v809_v58 }
 0x207   :  { %v1082_v59 = vpop.f32.mrb[14].mxu1 }
 0x208   :  { %898 = vst.msk [vmem:[#allocation8 + $0x78] sm:$0xff] %vm74_vm0, %v1082_v59  ;;  %v887_v60 = vpop.f32.mrb[15].mxu1 }
 0x209   :  { %897 = vst.msk [vmem:[#allocation8 + $0x70] sm:$0xff] %vm74_vm0, %v887_v60 }
 0x20a   :  { %1202 = shalt.err (!%p1199_p0)
}
 0x20b   :  { %s1203_s27 = scalar_lea.hbm %s1363_s3, 2048 }
 0x20c   :  { %p1204_p1 = scmp.ne.s32.totalorder %s1363_s3, %s1203_s27  ;;  %p1207_p2 = scmp.lt.u32.totalorder %s1203_s27, %s1363_s3 }
 0x20e   :  { %p1209_p3 = pnand %p1207_p2, %p1204_p1 }
 0x210   :  { %1212 = shalt.err (!%p1209_p3)
}
 0x211   :  { %910 = dma.vmem_to_hbm [thread:$0]  %s905_s21, 2048, %s1363_s3, [#allocation4], %s1221_s24, %s1221_s24, %s1222_s25  }
 0x212   :  { %1217 = dma.done.wait [#allocation4], 2048  }
 0x213   :  { %1218 = vsyncadd [#allocation4], 4294965248 }
 0x214   :  { %914 = vsyncpa [#allocation3], 1 }
 0x215   :  { %915 = vsyncpa [#allocation6], 1 }
 0x216   :  { %916 = vsyncpa [#allocation4], 1 }

</bundles_post_ra>
